<compile_context>
chip_gen: v7x
topology: tpu7x:2x2x1
jax: 0.10.0
libtpu: 0.0.40
codegen_flags: <defaults>
</compile_context>

<pallas_src>
import numpy as np
import jax
import jax.numpy as jnp
from jax import lax
from jax.experimental import pallas as pl
from jax.experimental.pallas import tpu as pltpu

KEYS = ["dist", "omega", "theta", "phi"]


def _make_motif_kernel(K, NBINS, LL, inv_ll):
    """Builds a kernel closed over the static shapes / constant 1/(L*L)."""

    def kernel(dist_ref, idx_ref, mask_ref, out_ref):
        # dist_ref: (K*NBINS, LL) f32 VMEM  -- per-key bin slabs stacked on sublanes
        # idx_ref : (K, LL)       i32 VMEM
        # mask_ref: (1, LL)       f32 VMEM
        # out_ref : (1, 1)        f32 SMEM
        m = mask_ref[...]                                        # (1, LL)
        mnz = m != 0.0                                           # hoisted: loop-invariant
        bins = lax.broadcasted_iota(jnp.int32, (NBINS, LL), 0)   # hoisted: loop-invariant

        # (1, LL) vector accumulator across keys; one cross-lane reduce at the end.
        acc = jnp.zeros((1, LL), jnp.float32)
        for k in range(K):  # K is tiny and static -> full unroll
            d = dist_ref[pl.ds(k * NBINS, NBINS), :]   # (NBINS, LL), static slice
            idx = idx_ref[pl.ds(k, 1), :]              # (1, LL), same layout as bins
            # Gather along the bins axis as a where-select + sublane reduce (VPU).
            # NOTE: do NOT rewrite as an MXU one-hot matmul (see header comment).
            probs = jnp.sum(jnp.where(bins == idx, d, 0.0),
                            axis=0, keepdims=True)               # (1, LL)
            # Guard against -inf * 0 -> NaN at masked-out positions (intentional
            # divergence from PyTorch when probs == 0 at a masked-out position).
            acc = acc + jnp.where(mnz, jnp.log(probs) * m, 0.0)

        # PyTorch .mean() divides each key's sum by L*L; hoisted to one multiply.
        out_ref[0, 0] = -jnp.sum(acc) * inv_ll

    return kernel


def motif_satisfaction_loss(distributions, bin_indices, mask):
    """distributions: [K, NBINS, L, L] f32, bin_indices: [K, L, L] i32, mask: [L, L] f32."""
    K, NBINS, L, _ = distributions.shape
    LL = L * L

    # Contiguous flatten to a lane-dense layout: lane dim = L*L (multiple of 128),
    # bins of all keys stacked along sublanes (avoids per-key 37 -> 40 padding).
    dist_flat = distributions.astype(jnp.float32).reshape(K * NBINS, LL)
    idx_flat = bin_indices.astype(jnp.int32).reshape(K, LL)
    mask_flat = mask.astype(jnp.float32).reshape(1, LL)

    kernel = _make_motif_kernel(K, NBINS, LL, np.float32(1.0 / LL))

    out = pl.pallas_call(
        kernel,
        out_shape=jax.ShapeDtypeStruct((1, 1), jnp.float32),
        in_specs=[
            pl.BlockSpec(memory_space=pltpu.MemorySpace.VMEM),
            pl.BlockSpec(memory_space=pltpu.MemorySpace.VMEM),
            pl.BlockSpec(memory_space=pltpu.MemorySpace.VMEM),
        ],
        out_specs=pl.BlockSpec(memory_space=pltpu.MemorySpace.SMEM),
    )(dist_flat, idx_flat, mask_flat)
    return out[0, 0]


def build_bin_indices(motif_np, bin_values_np):
    """Replicates Motif_Satisfaction.__init__ bin-index construction."""
    indices = np.abs(
        bin_values_np[np.newaxis, np.newaxis, :] - motif_np[:, :, np.newaxis]
    ).argmin(axis=-1)
    no_contact = np.argwhere(motif_np == 0)
    indices[no_contact[:, 0], no_contact[:, 1]] = 0
    return indices.astype(np.int32)


if __name__ == "__main__":
    L = 16        # sequence length (mask is [L, L])
    NBINS = 37    # number of distogram bins per key
    K = len(KEYS)

    key = jax.random.PRNGKey(0)
    k_logits, k_motif, k_zero, k_mask = jax.random.split(key, 4)

    # Structure distributions: softmax over the bins axis -> strictly positive probs.
    logits = jax.random.normal(k_logits, (K, NBINS, L, L), dtype=jnp.float32)
    distributions = jax.nn.softmax(logits, axis=1)

    # Deterministic synthetic motif targets + bin dictionary (per key), as in __init__.
    bin_values = np.linspace(2.0, 20.0, NBINS).astype(np.float32)   # cfg.bin_dict_np[key]
    motif_vals = np.asarray(
        jax.random.uniform(k_motif, (K, L, L), minval=2.0, maxval=20.0)
    ).astype(np.float32)
    zero_mask = np.asarray(jax.random.uniform(k_zero, (K, L, L))) < 0.3
    motif_vals[zero_mask] = 0.0                                      # "no contact" locations

    bin_indices_np = np.stack(
        [build_bin_indices(motif_vals[i], bin_values) for i in range(K)], axis=0
    )
    bin_indices = jnp.asarray(bin_indices_np, dtype=jnp.int32)

    # Binary mask [L, L].
    mask_np = (np.asarray(jax.random.uniform(k_mask, (L, L))) < 0.5).astype(np.float32)
    mask = jnp.asarray(mask_np)

    loss = motif_satisfaction_loss(distributions, bin_indices, mask)
    loss = jax.block_until_ready(loss)

    # Pure-numpy reference of the PyTorch forward for sanity.
    dist_np = np.asarray(distributions)
    rows = np.arange(L)[:, None]
    cols = np.arange(L)[None, :]
    ref = 0.0
    for i in range(K):
        probs = dist_np[i][bin_indices_np[i], rows, cols]            # gather along dim 0
        ref -= (np.log(probs) * mask_np).mean()
    np.testing.assert_allclose(float(loss), ref, rtol=1e-5, atol=1e-5)

    print("KERNEL_OK")
</pallas_src>

<mosaic_0001>
module attributes {stable_mosaic.version = 11 : i64} {
  func.func @kernel(%arg0: memref<148x256xf32, #tpu.memory_space<vmem>>, %arg1: memref<4x256xi32, #tpu.memory_space<vmem>>, %arg2: memref<1x256xf32, #tpu.memory_space<vmem>>, %arg3: memref<1x1xf32, #tpu.memory_space<smem>>) attributes {dimension_semantics = [], scalar_prefetch = 0 : i64, scratch_operands = 0 : i64, tpu.core_type = #tpu.core_type<tc>} {
    %c0 = arith.constant 0 : index
    %c0_0 = arith.constant 0 : index
    %0 = vector.load %arg2[%c0, %c0_0] : memref<1x256xf32, #tpu.memory_space<vmem>>, vector<1x256xf32>
    %cst = arith.constant 0.000000e+00 : f32
    %1 = vector.broadcast %cst : f32 to vector<1x256xf32>
    %2 = arith.cmpf one, %0, %1 : vector<1x256xf32>
    %3 = tpu.iota {dimensions = array<i32: 0>} : vector<37x256xi32>
    %cst_1 = arith.constant 0.000000e+00 : f32
    %4 = vector.broadcast %cst_1 : f32 to vector<1x256xf32>
    %c0_2 = arith.constant 0 : index
    %c0_3 = arith.constant 0 : index
    %5 = vector.load %arg0[%c0_2, %c0_3] : memref<148x256xf32, #tpu.memory_space<vmem>>, vector<37x256xf32>
    %c0_4 = arith.constant 0 : index
    %c0_5 = arith.constant 0 : index
    %6 = vector.load %arg1[%c0_4, %c0_5] : memref<4x256xi32, #tpu.memory_space<vmem>>, vector<1x256xi32>
    %7 = vector.broadcast %6 : vector<1x256xi32> to vector<37x256xi32>
    %8 = arith.cmpi eq, %3, %7 : vector<37x256xi32>
    %cst_6 = arith.constant 0.000000e+00 : f32
    %9 = vector.broadcast %cst_6 : f32 to vector<37x256xf32>
    %10 = arith.select %8, %5, %9 : vector<37x256xi1>, vector<37x256xf32>
    %cst_7 = arith.constant dense<0.000000e+00> : vector<256xf32>
    %11 = vector.multi_reduction <add>, %10, %cst_7 [0] : vector<37x256xf32> to vector<256xf32>
    %12 = vector.shape_cast %11 : vector<256xf32> to vector<1x256xf32>
    %13 = math.log %12 : vector<1x256xf32>
    %14 = arith.mulf %13, %0 : vector<1x256xf32>
    %cst_8 = arith.constant 0.000000e+00 : f32
    %15 = vector.broadcast %cst_8 : f32 to vector<1x256xf32>
    %16 = arith.select %2, %14, %15 : vector<1x256xi1>, vector<1x256xf32>
    %17 = arith.addf %4, %16 : vector<1x256xf32>
    %c37 = arith.constant 37 : index
    %c0_9 = arith.constant 0 : index
    %18 = vector.load %arg0[%c37, %c0_9] : memref<148x256xf32, #tpu.memory_space<vmem>>, vector<37x256xf32>
    %c1 = arith.constant 1 : index
    %c0_10 = arith.constant 0 : index
    %19 = vector.load %arg1[%c1, %c0_10] : memref<4x256xi32, #tpu.memory_space<vmem>>, vector<1x256xi32>
    %20 = vector.broadcast %19 : vector<1x256xi32> to vector<37x256xi32>
    %21 = arith.cmpi eq, %3, %20 : vector<37x256xi32>
    %cst_11 = arith.constant 0.000000e+00 : f32
    %22 = vector.broadcast %cst_11 : f32 to vector<37x256xf32>
    %23 = arith.select %21, %18, %22 : vector<37x256xi1>, vector<37x256xf32>
    %cst_12 = arith.constant dense<0.000000e+00> : vector<256xf32>
    %24 = vector.multi_reduction <add>, %23, %cst_12 [0] : vector<37x256xf32> to vector<256xf32>
    %25 = vector.shape_cast %24 : vector<256xf32> to vector<1x256xf32>
    %26 = math.log %25 : vector<1x256xf32>
    %27 = arith.mulf %26, %0 : vector<1x256xf32>
    %cst_13 = arith.constant 0.000000e+00 : f32
    %28 = vector.broadcast %cst_13 : f32 to vector<1x256xf32>
    %29 = arith.select %2, %27, %28 : vector<1x256xi1>, vector<1x256xf32>
    %30 = arith.addf %17, %29 : vector<1x256xf32>
    %c74 = arith.constant 74 : index
    %c0_14 = arith.constant 0 : index
    %31 = vector.load %arg0[%c74, %c0_14] : memref<148x256xf32, #tpu.memory_space<vmem>>, vector<37x256xf32>
    %c2 = arith.constant 2 : index
    %c0_15 = arith.constant 0 : index
    %32 = vector.load %arg1[%c2, %c0_15] : memref<4x256xi32, #tpu.memory_space<vmem>>, vector<1x256xi32>
    %33 = vector.broadcast %32 : vector<1x256xi32> to vector<37x256xi32>
    %34 = arith.cmpi eq, %3, %33 : vector<37x256xi32>
    %cst_16 = arith.constant 0.000000e+00 : f32
    %35 = vector.broadcast %cst_16 : f32 to vector<37x256xf32>
    %36 = arith.select %34, %31, %35 : vector<37x256xi1>, vector<37x256xf32>
    %cst_17 = arith.constant dense<0.000000e+00> : vector<256xf32>
    %37 = vector.multi_reduction <add>, %36, %cst_17 [0] : vector<37x256xf32> to vector<256xf32>
    %38 = vector.shape_cast %37 : vector<256xf32> to vector<1x256xf32>
    %39 = math.log %38 : vector<1x256xf32>
    %40 = arith.mulf %39, %0 : vector<1x256xf32>
    %cst_18 = arith.constant 0.000000e+00 : f32
    %41 = vector.broadcast %cst_18 : f32 to vector<1x256xf32>
    %42 = arith.select %2, %40, %41 : vector<1x256xi1>, vector<1x256xf32>
    %43 = arith.addf %30, %42 : vector<1x256xf32>
    %c111 = arith.constant 111 : index
    %c0_19 = arith.constant 0 : index
    %44 = vector.load %arg0[%c111, %c0_19] : memref<148x256xf32, #tpu.memory_space<vmem>>, vector<37x256xf32>
    %c3 = arith.constant 3 : index
    %c0_20 = arith.constant 0 : index
    %45 = vector.load %arg1[%c3, %c0_20] : memref<4x256xi32, #tpu.memory_space<vmem>>, vector<1x256xi32>
    %46 = vector.broadcast %45 : vector<1x256xi32> to vector<37x256xi32>
    %47 = arith.cmpi eq, %3, %46 : vector<37x256xi32>
    %cst_21 = arith.constant 0.000000e+00 : f32
    %48 = vector.broadcast %cst_21 : f32 to vector<37x256xf32>
    %49 = arith.select %47, %44, %48 : vector<37x256xi1>, vector<37x256xf32>
    %cst_22 = arith.constant dense<0.000000e+00> : vector<256xf32>
    %50 = vector.multi_reduction <add>, %49, %cst_22 [0] : vector<37x256xf32> to vector<256xf32>
    %51 = vector.shape_cast %50 : vector<256xf32> to vector<1x256xf32>
    %52 = math.log %51 : vector<1x256xf32>
    %53 = arith.mulf %52, %0 : vector<1x256xf32>
    %cst_23 = arith.constant 0.000000e+00 : f32
    %54 = vector.broadcast %cst_23 : f32 to vector<1x256xf32>
    %55 = arith.select %2, %53, %54 : vector<1x256xi1>, vector<1x256xf32>
    %56 = arith.addf %43, %55 : vector<1x256xf32>
    %57 = vector.shape_cast %56 : vector<1x256xf32> to vector<1x1x256xf32>
    %cst_24 = arith.constant dense<0.000000e+00> : vector<1xf32>
    %58 = vector.multi_reduction <add>, %57, %cst_24 [1, 2] : vector<1x1x256xf32> to vector<1xf32>
    %59 = vector.shape_cast %58 : vector<1xf32> to vector<1x1x1xf32>
    %60 = vector.extract %59[0, 0, 0] : f32 from vector<1x1x1xf32>
    %cst_25 = arith.constant 0.000000e+00 : f32
    %61 = arith.subf %cst_25, %60 : f32
    %cst_26 = arith.constant 3.906250e-03 : f32
    %62 = arith.mulf %61, %cst_26 : f32
    %c0_27 = arith.constant 0 : index
    %c0_28 = arith.constant 0 : index
    %63 = memref.load %arg3[%c0_27, %c0_28] : memref<1x1xf32, #tpu.memory_space<smem>>
    memref.store %62, %arg3[%c0_27, %c0_28] : memref<1x1xf32, #tpu.memory_space<smem>>
    return
  }
}

</mosaic_0001>

<bundles_post_ra>
// kernel: tpu_custom_call.1
= control target key start
LH: loop header
LB: loop body
LE: loop exit
PB: predicated region body
PF: predicated region fallthrough
CT: control target
= control target key end

     0   :  { %8 = vsyncpa [#allocation3], 0  ;;  %s977_s0 = inlined_call_operand.hbm [shape: f32[148,256], index: 0, kind: input, shape index: {}]   ;;  %s978_s1 = inlined_call_operand.hbm [shape: s32[4,256], index: 1, kind: input, shape index: {}]   ;;  %s979_s2 = inlined_call_operand.vmem [shape: f32[1,256], index: 2, kind: input, shape index: {}]   ;;  %s980_s3 = inlined_call_operand.hbm [shape: f32[1,1], index: 3, kind: output, shape index: {}]  }
   0x1   :  { %9 = vsyncpa [#allocation6], 0 }
   0x2   :  { %10 = vsyncpa [#allocation4], 0  ;;  %s671_s12 = smov [#allocation2]   ;;  %s611_s16 = scalar_lea.hbm %s977_s0, 4864 }
   0x3   :  { %s16_s13 = sshll.u32 %s671_s12, 4  ;;  %p612_p0 = scmp.ne.s32.totalorder %s977_s0, %s611_s16  ;;  %s17_s13 = int_to_ptr.vmem [resolvable:$true] %s16_s13 }
   0x4   :  { %p615_p1 = scmp.lt.u32.totalorder %s611_s16, %s977_s0 }
   0x6   :  { %p617_p2 = pnand %p615_p1, %p612_p0 }
   0x8   :  { %620 = shalt.err (!%p617_p2)
}
   0x9   :  { %s621_s21 = scalar_lea.vmem %s17_s13, 4864  ;;  %p626_p4 = scmp.lt.s32.totalorder %s17_s13, %s17_s13 }
   0xa   :  { %p622_p3 = scmp.ne.s32.totalorder %s17_s13, %s621_s21  ;;  %p627_p5 = scmp.lt.s32.totalorder %s621_s21, %s621_s21 }
   0xc   :  { %p628_p6 = por %p627_p5, %p626_p4 }
   0xe   :  { %p629_p7 = pnand %p628_p6, %p622_p3 }
  0x10   :  { %632 = shalt.err (!%p629_p7)
}
  0x11   :  { %s672_s22 = smov 256   ;;  %s673_s23 = smov 16  }
  0x12   :  { %22 = dma.hbm_to_vmem [thread:$0]  %s977_s0, 4864, %s17_s13, [#allocation3], %s672_s22, %s672_s22, %s673_s23  }
  0x13   :  { %s674_s26 = smov [#allocation5]   ;;  %s633_s30 = scalar_lea.hbm %s978_s1, 128 }
  0x14   :  { %s29_s27 = sshll.u32 %s674_s26, 4  ;;  %p634_p8 = scmp.ne.s32.totalorder %s978_s1, %s633_s30  ;;  %s30_s27 = int_to_ptr.vmem [resolvable:$true] %s29_s27 }
  0x15   :  { %p637_p9 = scmp.lt.u32.totalorder %s633_s30, %s978_s1 }
  0x17   :  { %p639_p10 = pnand %p637_p9, %p634_p8 }
  0x19   :  { %642 = shalt.err (!%p639_p10)
}
  0x1a   :  { %s643_s8 = scalar_lea.vmem %s30_s27, 128  ;;  %p648_p12 = scmp.lt.s32.totalorder %s30_s27, %s30_s27 }
  0x1b   :  { %p644_p11 = scmp.ne.s32.totalorder %s30_s27, %s643_s8  ;;  %p649_p13 = scmp.lt.s32.totalorder %s643_s8, %s643_s8 }
  0x1d   :  { %p650_p0 = por %p649_p13, %p648_p12 }
  0x1f   :  { %p651_p1 = pnand %p650_p0, %p644_p11 }
  0x21   :  { %654 = shalt.err (!%p651_p1)
}
  0x22   :  { %32 = dma.hbm_to_vmem [thread:$0]  %s978_s1, 128, %s30_s27, [#allocation6]  }
  0x23   :  { %665 = dma.done.wait [#allocation3], 4864  }
  0x24   :  { %666 = vsyncadd [#allocation3], 4294962432 }
  0x25   :  { %667 = dma.done.wait [#allocation6], 128  }
  0x26   :  { %668 = vsyncadd [#allocation6], 4294967168  ;;  %v43_v0 = vlaneseq  ;;  %vm91_vm0 = vcmask 1044480   ;;  %v148_v7 = vld [vmem:[#allocation2 + $0x40] sm:$0xe0]  ;;  %v150_v10 = vld [vmem:[#allocation2 + $0x50] sm:$0xff] }
  0x27   :  { %v59_v8 = vld [vmem:[#allocation5] ss:$4 sm:$0x3]  ;;  %v149_v9 = vld [vmem:[#allocation2 + $0x48] sm:$0xe0]  ;;  %v743_v14 = vld [vmem:[#allocation2 + $0x58] sm:$0xff] }
  0x28   :  { %v721_v1 = vshrl.u32 %v43_v0, 7  ;;  %vm192_vm1 = vcmask 1042432   ;;  %v49_v15 = vld [vmem:[#allocation2] sm:$0xff]  ;;  %v50_v16 = vld [vmem:[#allocation2 + $0x8] sm:$0xff]  ;;  %v51_v17 = vld [vmem:[#allocation2 + $0x10] sm:$0xff]  ;;  %v193_v18 = vrot.slane %v148_v7, 5 }
  0x29   :  { %v194_v19 = vrot.slane %v150_v10, 5  ;;  %v196_v20 = vrot.slane %v149_v9, 5  ;;  %v52_v21 = vld [vmem:[#allocation2 + $0x18] sm:$0xff]  ;;  %v53_v22 = vld [vmem:[#allocation2 + $0x20] sm:$0xff]  ;;  %v54_v24 = vld [vmem:[#allocation2 + $0x28] sm:$0xff]  ;;  %v197_v27 = vrot.slane %v743_v14, 5 }
  0x2a   :  { %v724_v2 = vsub.s32 0, %v721_v1  ;;  %v727_v3 = vsub.s32 1, %v721_v1  ;;  %v730_v4 = vadd.s32 8, %v721_v1  ;;  %v733_v5 = vadd.s32 16, %v721_v1  ;;  %v749_v23 = vld [vmem:[#allocation2 + $0x60] sm:$0xff]  ;;  %v55_v28 = vld [vmem:[#allocation2 + $0x30] sm:$0xff] }
  0x2b   :  { %v736_v6 = vadd.s32 24, %v721_v1  ;;  %v739_v11 = vadd.s32 32, %v721_v1  ;;  %v57_v25 = vld [vmem:[#allocation2 + $0x40] sm:$0x1f]  ;;  %v58_v26 = vld [vmem:[#allocation2 + $0x48] sm:$0x1f]  ;;  %v195_v51 = vsel %vm192_vm1, %v193_v18, %v194_v19  ;;  %v198_v54 = vsel %vm192_vm1, %v196_v20, %v197_v27 }
  0x2c   :  { %v63_v12 = vrot.slane %v59_v8, %v724_v2  ;;  %v67_v13 = vrot.slane %v59_v8, %v727_v3  ;;  %v56_v29 = vld [vmem:[#allocation2 + $0x38] sm:$0xff]  ;;  %v161_v34 = vld [vmem:[#allocation5 + $0x1] ss:$4 sm:$0x3]  ;;  %v199_v35 = vrot.slane %v749_v23, 5  ;;  %v153_v43 = vld [vmem:[#allocation2 + $0x68] sm:$0xff] }
  0x2d   :  { %v165_v46 = vrot.slane %v161_v34, %v724_v2  ;;  %v169_v47 = vrot.slane %v161_v34, %v727_v3  ;;  %v154_v52 = vld [vmem:[#allocation2 + $0x70] sm:$0xff]  ;;  %v155_v53 = vld [vmem:[#allocation2 + $0x78] sm:$0xff]  ;;  %v201_v56 = vrot.slane %v153_v43, 5  ;;  %v156_v59 = vld [vmem:[#allocation2 + $0x80] sm:$0xff]  ;;  %s655_s15 = scalar_lea.hbm %s980_s3, 16 }
  0x2e   :  { %vm68_vm2 = vcmp.eq.s32.totalorder %v721_v1, %v63_v12  ;;  %vm69_vm3 = vcmp.eq.s32.totalorder %v721_v1, %v67_v13  ;;  %vm70_vm4 = vcmp.eq.s32.totalorder %v730_v4, %v63_v12  ;;  %vm71_vm5 = vcmp.eq.s32.totalorder %v730_v4, %v67_v13  ;;  %v157_v60 = vld [vmem:[#allocation2 + $0x88] sm:$0xff]  ;;  %v158_v61 = vld [vmem:[#allocation2 + $0x90] sm:$0x3]  ;;  %v159_v62 = vld [vmem:[#allocation2 + $0x98] sm:$0x3]  ;;  %p656_p2 = scmp.ne.s32.totalorder %s980_s3, %s655_s15  ;;  %p659_p3 = scmp.lt.u32.totalorder %s655_s15, %s980_s3 }
  0x2f   :  { %vm72_vm6 = vcmp.eq.s32.totalorder %v733_v5, %v63_v12  ;;  %vm73_vm7 = vcmp.eq.s32.totalorder %v733_v5, %v67_v13  ;;  %vm74_vm8 = vcmp.eq.s32.totalorder %v736_v6, %v63_v12  ;;  %vm76_vm9 = vcmp.eq.s32.totalorder %v739_v11, %v63_v12 }
  0x30   :  { %vm77_vm10 = vcmp.eq.s32.totalorder %v739_v11, %v67_v13  ;;  %v78_v30 = vsel %vm68_vm2, %v49_v15, 0.0  ;;  %v79_v31 = vsel %vm69_vm3, %v50_v16, 0.0  ;;  %vm75_vm11 = vcmp.eq.s32.totalorder %v736_v6, %v67_v13  ;;  %p661_p4 = pnand %p659_p3, %p656_p2 }
  0x31   :  { %v80_v32 = vsel %vm70_vm4, %v51_v17, 0.0  ;;  %v81_v33 = vsel %vm71_vm5, %v52_v21, 0.0  ;;  %v82_v36 = vsel %vm72_vm6, %v53_v22, 0.0  ;;  %v83_v37 = vsel %vm73_vm7, %v54_v24, 0.0 }
  0x32   :  { %v86_v38 = vsel %vm76_vm9, %v57_v25, 0.0  ;;  %v87_v39 = vsel %vm77_vm10, %v58_v26, 0.0  ;;  %v84_v40 = vsel %vm74_vm8, %v55_v28, 0.0  ;;  %v88_v41 = vadd.f32 %v80_v32, %v78_v30 }
  0x33   :  { %v100_v42 = vadd.f32 %v81_v33, %v79_v31  ;;  %v85_v44 = vsel %vm75_vm11, %v56_v29, 0.0  ;;  %v92_v45 = vsel %vm91_vm0, %v86_v38, 0.0  ;;  %v103_v50 = vsel %vm91_vm0, %v87_v39, 0.0  ;;  %v294_v31 = vld [vmem:[#allocation5 + $0x2] ss:$4 sm:$0x3] }
  0x34   :  { %v89_v48 = vadd.f32 %v88_v41, %v82_v36  ;;  %vm170_vm12 = vcmp.eq.s32.totalorder %v721_v1, %v165_v46  ;;  %v200_v55 = vsel %vm192_vm1, %v194_v19, %v199_v35  ;;  %vm171_vm13 = vcmp.eq.s32.totalorder %v721_v1, %v169_v47 }
  0x35   :  { %v101_v49 = vadd.f32 %v100_v42, %v83_v37  ;;  %vm172_vm14 = vcmp.eq.s32.totalorder %v730_v4, %v165_v46  ;;  %vm173_vm15 = vcmp.eq.s32.totalorder %v730_v4, %v169_v47  ;;  %vm174_vm2 = vcmp.eq.s32.totalorder %v733_v5, %v165_v46 }
  0x36   :  { %v90_v57 = vadd.f32 %v89_v48, %v84_v40  ;;  %vm175_vm3 = vcmp.eq.s32.totalorder %v733_v5, %v169_v47  ;;  %vm176_vm4 = vcmp.eq.s32.totalorder %v736_v6, %v165_v46  ;;  %vm178_vm5 = vcmp.eq.s32.totalorder %v739_v11, %v165_v46  ;;  %v283_v48 = vld [vmem:[#allocation2 + $0x90] sm:$0xfc] }
  0x37   :  { %v102_v58 = vadd.f32 %v101_v49, %v85_v44  ;;  %v203_v7 = vrot.slane %v154_v52, 5  ;;  %v205_v8 = vrot.slane %v155_v53, 5  ;;  %v207_v9 = vrot.slane %v156_v59, 5  ;;  %v285_v52 = vld [vmem:[#allocation2 + $0xa0] sm:$0xff]  ;;  %v288_v59 = vld [vmem:[#allocation2 + $0xb8] sm:$0xff] }
  0x38   :  { %v93_v63 = vadd.f32 %v92_v45, %v90_v57  ;;  %v209_v10 = vrot.slane %v157_v60, 5  ;;  %v211_v12 = vrot.slane %v158_v61, 5  ;;  %v202_v15 = vsel %vm192_vm1, %v197_v27, %v201_v56  ;;  %v289_v60 = vld [vmem:[#allocation2 + $0xc0] sm:$0xff] }
  0x39   :  { %v104_v0 = vadd.f32 %v103_v50, %v102_v58  ;;  %v213_v16 = vrot.slane %v159_v62, 5  ;;  %vm179_vm6 = vcmp.eq.s32.totalorder %v739_v11, %v169_v47  ;;  %v204_v17 = vsel %vm192_vm1, %v199_v35, %v203_v7  ;;  %v290_v62 = vld [vmem:[#allocation2 + $0xc8] sm:$0xff] }
  0x3a   :  { %v94_v13 = vrot.slane %v93_v63, 4  ;;  %v206_v18 = vsel %vm192_vm1, %v201_v56, %v205_v8  ;;  %v208_v19 = vsel %vm192_vm1, %v203_v7, %v207_v9  ;;  %v212_v22 = vsel %vm192_vm1, %v207_v9, %v211_v12  ;;  %v287_v56 = vld [vmem:[#allocation2 + $0xb0] sm:$0xff] }
  0x3b   :  { %v105_v14 = vrot.slane %v104_v0, 4  ;;  %v225_v23 = vsel %vm170_vm12, %v195_v51, 0.0  ;;  %v214_v24 = vsel %vm192_vm1, %v209_v10, %v213_v16  ;;  %v226_v25 = vsel %vm171_vm13, %v198_v54, 0.0  ;;  %v284_v54 = vld [vmem:[#allocation2 + $0x98] sm:$0xfc] }
  0x3c   :  { %v95_v20 = vadd.f32 %v94_v13, %v93_v63  ;;  %v227_v26 = vsel %vm172_vm14, %v200_v55, 0.0  ;;  %v228_v27 = vsel %vm173_vm15, %v202_v15, 0.0  ;;  %vm177_vm7 = vcmp.eq.s32.totalorder %v736_v6, %v169_v47  ;;  %v286_v55 = vld [vmem:[#allocation2 + $0xa8] sm:$0xff]  ;;  %v291_v7 = vld [vmem:[#allocation2 + $0xd0] sm:$0x7f] }
  0x3d   :  { %v106_v21 = vadd.f32 %v105_v14, %v104_v0  ;;  %v210_v29 = vsel %vm192_vm1, %v205_v8, %v209_v10  ;;  %v229_v30 = vsel %vm174_vm2, %v204_v17, 0.0  ;;  %v230_v33 = vsel %vm175_vm3, %v206_v18, 0.0  ;;  %v292_v13 = vld [vmem:[#allocation2 + $0xd8] sm:$0x7f] }
  0x3e   :  { %v96_v28 = vrot.slane %v95_v20, 2  ;;  %v233_v34 = vsel %vm178_vm5, %v212_v22, 0.0  ;;  %v235_v35 = vadd.f32 %v227_v26, %v225_v23  ;;  %v231_v37 = vsel %vm176_vm4, %v208_v19, 0.0 }
  0x3f   :  { %v107_v32 = vrot.slane %v106_v21, 2  ;;  %v234_v38 = vsel %vm179_vm6, %v214_v24, 0.0  ;;  %v246_v39 = vadd.f32 %v228_v27, %v226_v25  ;;  %v232_v40 = vsel %vm177_vm7, %v210_v29, 0.0 }
  0x40   :  { %v807_v36 = vadd.f32 %v96_v28, %v95_v20  ;;  %v236_v41 = vadd.f32 %v235_v35, %v229_v30  ;;  %v814_v42 = vrot.slane %v294_v31, %v724_v2  ;;  %v817_v43 = vrot.slane %v294_v31, %v727_v3 }
  0x41   :  { %v238_v44 = vsel %vm91_vm0, %v233_v34, 0.0  ;;  %v247_v45 = vadd.f32 %v246_v39, %v230_v33  ;;  %v249_v46 = vsel %vm91_vm0, %v234_v38, 0.0  ;;  %v822_v47 = vadd.f32 %v107_v32, %v106_v21 }
  0x42   :  { %v237_v49 = vadd.f32 %v236_v41, %v231_v37  ;;  %v98_v50 = vrot.slane %v807_v36, 1  ;;  %vm323_vm1 = vcmask 1045504   ;;  %vm303_vm8 = vcmp.eq.s32.totalorder %v721_v1, %v814_v42 }
  0x43   :  { %v248_v51 = vadd.f32 %v247_v45, %v232_v40  ;;  %vm304_vm9 = vcmp.eq.s32.totalorder %v721_v1, %v817_v43  ;;  %v324_v57 = vrot.slane %v283_v48, 2  ;;  %vm305_vm10 = vcmp.eq.s32.totalorder %v730_v4, %v814_v42 }
  0x44   :  { %v239_v53 = vadd.f32 %v238_v44, %v237_v49  ;;  %vm306_vm11 = vcmp.eq.s32.totalorder %v730_v4, %v817_v43  ;;  %vm307_vm12 = vcmp.eq.s32.totalorder %v733_v5, %v814_v42  ;;  %vm308_vm13 = vcmp.eq.s32.totalorder %v733_v5, %v817_v43 }
  0x45   :  { %v250_v58 = vadd.f32 %v249_v46, %v248_v51  ;;  %vm309_vm14 = vcmp.eq.s32.totalorder %v736_v6, %v814_v42  ;;  %v325_v63 = vrot.slane %v285_v52, 2  ;;  %v327_v8 = vrot.slane %v284_v54, 2  ;;  %v423_v54 = vld [vmem:[#allocation5 + $0x3] ss:$4 sm:$0x3] }
  0x46   :  { %v240_v61 = vrot.slane %v239_v53, 4  ;;  %v328_v9 = vrot.slane %v286_v55, 2  ;;  %v330_v10 = vrot.slane %v287_v56, 2  ;;  %vm311_vm15 = vcmp.eq.s32.totalorder %v739_v11, %v814_v42 }
  0x47   :  { %v251_v0 = vrot.slane %v250_v58, 4  ;;  %v332_v14 = vrot.slane %v288_v59, 2  ;;  %v334_v15 = vrot.slane %v289_v60, 2  ;;  %v326_v17 = vsel %vm323_vm1, %v324_v57, %v325_v63 }
  0x48   :  { %v241_v12 = vadd.f32 %v240_v61, %v239_v53  ;;  %v331_v18 = vsel %vm323_vm1, %v325_v63, %v330_v10  ;;  %v336_v19 = vrot.slane %v290_v62, 2  ;;  %v329_v21 = vsel %vm323_vm1, %v327_v8, %v328_v9  ;;  %v410_v63 = vld [vmem:[#allocation2 + $0xd0] sm:$0x80] }
  0x49   :  { %v252_v16 = vadd.f32 %v251_v0, %v250_v58  ;;  %v333_v22 = vsel %vm323_vm1, %v328_v9, %v332_v14  ;;  %v338_v23 = vrot.slane %v291_v7, 2  ;;  %vm312_vm2 = vcmp.eq.s32.totalorder %v739_v11, %v817_v43  ;;  %v411_v0 = vld [vmem:[#allocation2 + $0xd8] sm:$0x80]  ;;  %v412_v7 = vld [vmem:[#allocation2 + $0xe0] sm:$0xff]  ;;  %v413_v9 = vld [vmem:[#allocation2 + $0xe8] sm:$0xff] }
  0x4a   :  { %v242_v20 = vrot.slane %v241_v12, 2  ;;  %v335_v25 = vsel %vm323_vm1, %v330_v10, %v334_v15  ;;  %v340_v26 = vrot.slane %v292_v13, 2  ;;  %v337_v28 = vsel %vm323_vm1, %v332_v14, %v336_v19  ;;  %v414_v10 = vld [vmem:[#allocation2 + $0xf0] sm:$0xff]  ;;  %v416_v14 = vld [vmem:[#allocation2 + $0x100] sm:$0xff] }
  0x4b   :  { %v253_v24 = vrot.slane %v252_v16, 2  ;;  %v352_v29 = vsel %vm303_vm8, %v326_v17, 0.0  ;;  %v354_v30 = vsel %vm305_vm10, %v331_v18, 0.0  ;;  %v339_v32 = vsel %vm323_vm1, %v334_v15, %v338_v23  ;;  %v418_v17 = vld [vmem:[#allocation2 + $0x110] sm:$0xff]  ;;  %v419_v18 = vld [vmem:[#allocation2 + $0x118] sm:$0xff] }
  0x4c   :  { %v243_v27 = vadd.f32 %v242_v20, %v241_v12  ;;  %v353_v33 = vsel %vm304_vm9, %v329_v21, 0.0  ;;  %v355_v34 = vsel %vm306_vm11, %v333_v22, 0.0  ;;  %v109_v35 = vrot.slane %v822_v47, 1  ;;  %v415_v12 = vld [vmem:[#allocation2 + $0xf8] sm:$0xff] }
  0x4d   :  { %v254_v31 = vadd.f32 %v253_v24, %v252_v16  ;;  %vm310_vm3 = vcmp.eq.s32.totalorder %v736_v6, %v817_v43  ;;  %v341_v37 = vsel %vm323_vm1, %v336_v19, %v340_v26  ;;  %v356_v38 = vsel %vm307_vm12, %v335_v25, 0.0  ;;  %v417_v16 = vld [vmem:[#allocation2 + $0x108] sm:$0xff] }
  0x4e   :  { %v244_v39 = vrot.slane %v243_v27, 1  ;;  %v357_v40 = vsel %vm308_vm13, %v337_v28, 0.0  ;;  %v360_v41 = vsel %vm311_vm15, %v338_v23, 0.0  ;;  %v362_v44 = vadd.f32 %v354_v30, %v352_v29  ;;  %v420_v23 = vld [vmem:[#allocation2 + $0x120] sm:$0xf] }
  0x4f   :  { %v255_v45 = vrot.slane %v254_v31, 1  ;;  %v358_v48 = vsel %vm309_vm14, %v339_v32, 0.0  ;;  %v361_v49 = vsel %vm312_vm2, %v340_v26, 0.0  ;;  %v373_v46 = vadd.f32 %v355_v34, %v353_v33  ;;  %v421_v29 = vld [vmem:[#allocation2 + $0x128] sm:$0xf] }
  0x50   :  { %v99_v51 = vadd.f32 %v98_v50, %v807_v36  ;;  %v359_v52 = vsel %vm310_vm3, %v341_v37, 0.0  ;;  %v363_v53 = vadd.f32 %v362_v44, %v356_v38  ;;  %v110_v55 = vadd.f32 %v109_v35, %v822_v47 }
  0x51   :  { %v365_v56 = vsel %vm91_vm0, %v360_v41, 0.0  ;;  %v374_v57 = vadd.f32 %v373_v46, %v357_v40  ;;  %v245_v58 = vadd.f32 %v244_v39, %v243_v27  ;;  %v376_v59 = vsel %vm91_vm0, %v361_v49, 0.0 }
  0x52   :  { %v364_v42 = vadd.f32 %v363_v53, %v358_v48  ;;  %v256_v60 = vadd.f32 %v255_v45, %v254_v31  ;;  %v887_v61 = vrot.slane %v423_v54, %v724_v2  ;;  %595 = vlog2.f32 %v99_v51 }
  0x53   :  { %v375_v43 = vadd.f32 %v374_v57, %v359_v52  ;;  %v890_v36 = vrot.slane %v423_v54, %v727_v3  ;;  %597 = vlog2.f32 %v110_v55  ;;  %vm454_vm5 = vcmask 1040384  }
  0x54   :  { %v366_v62 = vadd.f32 %v365_v56, %v364_v42  ;;  %599 = vlog2.f32 %v245_v58  ;;  %vm432_vm4 = vcmp.eq.s32.totalorder %v721_v1, %v887_v61  ;;  %vm434_vm7 = vcmp.eq.s32.totalorder %v730_v4, %v887_v61 }
  0x55   :  { %v377_v50 = vadd.f32 %v376_v59, %v375_v43  ;;  %601 = vlog2.f32 %v256_v60  ;;  %vm433_vm6 = vcmp.eq.s32.totalorder %v721_v1, %v890_v36  ;;  %vm436_vm1 = vcmp.eq.s32.totalorder %v733_v5, %v887_v61 }
  0x56   :  { %v367_v47 = vrot.slane %v366_v62, 4  ;;  %v455_v19 = vrot.slane %v410_v63, 7  ;;  %v456_v20 = vrot.slane %v412_v7, 7  ;;  %v458_v21 = vrot.slane %v411_v0, 7 }
  0x57   :  { %v378_v8 = vrot.slane %v377_v50, 4  ;;  %v459_v24 = vrot.slane %v413_v9, 7  ;;  %v461_v25 = vrot.slane %v414_v10, 7  ;;  %v463_v26 = vrot.slane %v415_v12, 7 }
  0x58   :  { %v368_v13 = vadd.f32 %v367_v47, %v366_v62  ;;  %vm435_vm8 = vcmp.eq.s32.totalorder %v730_v4, %v890_v36  ;;  %vm437_vm9 = vcmp.eq.s32.totalorder %v733_v5, %v890_v36  ;;  %vm438_vm10 = vcmp.eq.s32.totalorder %v736_v6, %v887_v61 }
  0x59   :  { %v379_v15 = vadd.f32 %v378_v8, %v377_v50  ;;  %v465_v30 = vrot.slane %v416_v14, 7  ;;  %v467_v31 = vrot.slane %v417_v16, 7  ;;  %v469_v32 = vrot.slane %v418_v17, 7 }
  0x5a   :  { %v369_v22 = vrot.slane %v368_v13, 2  ;;  %v457_v34 = vsel %vm454_vm5, %v455_v19, %v456_v20  ;;  %v471_v35 = vrot.slane %v419_v18, 7  ;;  %v473_v37 = vrot.slane %v420_v23, 7 }
  0x5b   :  { %v380_v27 = vrot.slane %v379_v15, 2  ;;  %v460_v40 = vsel %vm454_vm5, %v458_v21, %v459_v24  ;;  %v462_v41 = vsel %vm454_vm5, %v456_v20, %v461_v25  ;;  %v464_v44 = vsel %vm454_vm5, %v459_v24, %v463_v26 }
  0x5c   :  { %v370_v28 = vadd.f32 %v369_v22, %v368_v13  ;;  %v596_v38 = vpop.eup %595  ;;  %vm440_vm11 = vcmp.eq.s32.totalorder %v739_v11, %v887_v61  ;;  %vm441_vm12 = vcmp.eq.s32.totalorder %v739_v11, %v890_v36  ;;  %v475_v49 = vrot.slane %v421_v29, 7 }
  0x5d   :  { %v381_v33 = vadd.f32 %v380_v27, %v379_v15  ;;  %v598_v45 = vpop.eup %597  ;;  %v466_v51 = vsel %vm454_vm5, %v461_v25, %v465_v30  ;;  %v468_v52 = vsel %vm454_vm5, %v463_v26, %v467_v31  ;;  %v474_v53 = vsel %vm454_vm5, %v469_v32, %v473_v37 }
  0x5e   :  { %v371_v39 = vrot.slane %v370_v28, 1  ;;  %v600_v46 = vpop.eup %599  ;;  %v487_v54 = vsel %vm432_vm4, %v457_v34, 0.0  ;;  %v476_v56 = vsel %vm454_vm5, %v471_v35, %v475_v49  ;;  %v488_v57 = vsel %vm433_vm6, %v460_v40, 0.0 }
  0x5f   :  { %v382_v48 = vrot.slane %v381_v33, 1  ;;  %v602_v55 = vpop.eup %601  ;;  %v489_v58 = vsel %vm434_vm7, %v462_v41, 0.0  ;;  %v490_v42 = vsel %vm435_vm8, %v464_v44, 0.0  ;;  %vm439_vm13 = vcmp.eq.s32.totalorder %v736_v6, %v890_v36  ;;  %v41_v36 = vld [vmem:[%s979_s2] sm:$0x3] }
  0x60   :  { %v372_v59 = vadd.f32 %v371_v39, %v370_v28  ;;  %v470_v60 = vsel %vm454_vm5, %v465_v30, %v469_v32  ;;  %v472_v43 = vsel %vm454_vm5, %v467_v31, %v471_v35  ;;  %v491_v50 = vsel %vm436_vm1, %v466_v51, 0.0 }
  0x61   :  { %v383_v62 = vadd.f32 %v382_v48, %v381_v33  ;;  %v492_v47 = vsel %vm437_vm9, %v468_v52, 0.0  ;;  %v495_v4 = vsel %vm440_vm11, %v474_v53, 0.0  ;;  %v496_v63 = vsel %vm441_vm12, %v476_v56, 0.0 }
  0x62   :  { %v497_v0 = vadd.f32 %v489_v58, %v487_v54  ;;  %v508_v7 = vadd.f32 %v490_v42, %v488_v57  ;;  %v493_v8 = vsel %vm438_vm10, %v470_v60, 0.0  ;;  %v494_v9 = vsel %vm439_vm13, %v472_v43, 0.0 }
  0x63   :  { %603 = vlog2.f32 %v372_v59  ;;  %v500_v5 = vsel %vm91_vm0, %v495_v4, 0.0  ;;  %v511_v13 = vsel %vm91_vm0, %v496_v63, 0.0  ;;  %v675_v61 = vmov 1966171168  }
  0x64   :  { %v498_v10 = vadd.f32 %v497_v0, %v491_v50  ;;  %v509_v12 = vadd.f32 %v508_v7, %v492_v47  ;;  %605 = vlog2.f32 %v383_v62  ;;  %v132_v18 = vunpack.c.l.s4 %v675_v61 }
  0x65   :  { %v112_v19 = vmul.f32 0.6931472, %v596_v38  ;;  %v119_v20 = vrot.slane %v41_v36, %v724_v2  ;;  %v114_v23 = vmul.f32 0.6931472, %v598_v45  ;;  %v123_v24 = vrot.slane %v41_v36, %v727_v3 }
  0x66   :  { %v499_v14 = vadd.f32 %v498_v10, %v493_v8  ;;  %v510_v15 = vadd.f32 %v509_v12, %v494_v9  ;;  %v258_v25 = vmul.f32 0.6931472, %v600_v46  ;;  %v260_v26 = vmul.f32 0.6931472, %v602_v55 }
  0x67   :  { %v133_v31 = vunpack.c.0.s8 %v132_v18  ;;  %v126_v34 = vmul.f32 %v119_v20, %v112_v19  ;;  %v127_v35 = vmul.f32 %v123_v24, %v114_v23  ;;  %vm42_vm0 = vcmp.ne.f32.partialorder %v41_v36, 0.0 }
  0x68   :  { %v501_v16 = vadd.f32 %v500_v5, %v499_v14  ;;  %v512_v11 = vadd.f32 %v511_v13, %v510_v15  ;;  %v261_v37 = vmul.f32 %v258_v25, %v119_v20  ;;  %v262_v38 = vmul.f32 %v260_v26, %v123_v24 }
  0x69   :  { %v130_v49 = vcombine.low %v126_v34, %v127_v35  ;;  %v136_v46 = vsub.s32 %v133_v31, %v721_v1 }
  0x6a   :  { %v502_v17 = vrot.slane %v501_v16, 4  ;;  %v513_v6 = vrot.slane %v512_v11, 4  ;;  %v265_v51 = vcombine.low %v261_v37, %v262_v38 }
  0x6b   :  { %v137_v54 = vrot.slane %v130_v49, %v136_v46 }
  0x6c   :  { %v503_v21 = vadd.f32 %v502_v17, %v501_v16  ;;  %v514_v22 = vadd.f32 %v513_v6, %v512_v11  ;;  %v272_v55 = vrot.slane %v265_v51, %v136_v46 }
  0x6d   :  { %v604_v27 = vpop.eup %603  ;;  %v144_v57 = vrot.slane %v137_v54, %v136_v46 }
  0x6e   :  { %v504_v28 = vrot.slane %v503_v21, 2  ;;  %v515_v29 = vrot.slane %v514_v22, 2  ;;  %v606_v30 = vpop.eup %605  ;;  %v385_v39 = vmul.f32 0.6931472, %v604_v27  ;;  %v279_v58 = vrot.slane %v272_v55, %v136_v46 }
  0x6f   :  { %v387_v40 = vmul.f32 0.6931472, %v606_v30  ;;  %v146_v62 = vsel %vm42_vm0, %v144_v57, 0.0 }
  0x70   :  { %v505_v32 = vadd.f32 %v504_v28, %v503_v21  ;;  %v516_v33 = vadd.f32 %v515_v29, %v514_v22  ;;  %v388_v52 = vmul.f32 %v385_v39, %v119_v20  ;;  %v281_v50 = vsel %vm42_vm0, %v279_v58, 0.0 }
  0x71   :  { %v389_v53 = vmul.f32 %v387_v40, %v123_v24  ;;  %v282_v0 = vadd.f32 %v281_v50, %v146_v62 }
  0x72   :  { %v506_v41 = vrot.slane %v505_v32, 1  ;;  %v517_v44 = vrot.slane %v516_v33, 1 }
  0x73   :  { %v392_v56 = vcombine.low %v388_v52, %v389_v53 }
  0x74   :  { %v507_v45 = vadd.f32 %v506_v41, %v505_v32  ;;  %v518_v48 = vadd.f32 %v517_v44, %v516_v33 }
  0x75   :  { %v399_v42 = vrot.slane %v392_v56, %v136_v46 }
  0x76   :  { %607 = vlog2.f32 %v507_v45 }
  0x77   :  { %609 = vlog2.f32 %v518_v48  ;;  %v406_v1 = vrot.slane %v399_v42, %v136_v46 }
  0x79   :  { %v408_v7 = vsel %vm42_vm0, %v406_v1, 0.0 }
  0x7a   :  { %v409_v10 = vadd.f32 %v408_v7, %v282_v0 }
  0x80   :  { %v608_v59 = vpop.eup %607 }
  0x81   :  { %v610_v60 = vpop.eup %609  ;;  %v520_v43 = vmul.f32 0.6931472, %v608_v59 }
  0x82   :  { %v522_v47 = vmul.f32 0.6931472, %v610_v60 }
  0x83   :  { %v523_v4 = vmul.f32 %v520_v43, %v119_v20 }
  0x84   :  { %v524_v63 = vmul.f32 %v522_v47, %v123_v24 }
  0x86   :  { %v527_v8 = vcombine.low %v523_v4, %v524_v63 }
  0x88   :  { %v534_v9 = vrot.slane %v527_v8, %v136_v46 }
  0x8a   :  { %v541_v12 = vrot.slane %v534_v9, %v136_v46 }
  0x8c   :  { %v543_v5 = vsel %vm42_vm0, %v541_v12, 0.0 }
  0x8d   :  { %v544_v13 = vadd.f32 %v543_v5, %v409_v10 }
  0x8f   :  { %v549_v14 = vrot.slane %v544_v13, %v724_v2  ;;  %v553_v15 = vrot.slane %v544_v13, %v727_v3 }
  0x91   :  { %v556_v16 = vsel %vm454_vm5, %v549_v14, 0.0  ;;  %v557_v11 = vsel %vm454_vm5, %v553_v15, 0.0 }
  0x92   :  { %v558_v17 = vadd.f32 %v557_v11, %v556_v16 }
  0x94   :  { %559 = vadd.xlane.f32.xlu0 %v558_v17 }
 0x121   :  { %v560_v6 = vpop.xlane.xlu0 %559 }
 0x122   :  { %v561_v61 = vrot.slane %v560_v6, 4 }
 0x124   :  { %v562_v18 = vadd.f32 %v561_v61, %v560_v6 }
 0x126   :  { %v563_v19 = vrot.slane %v562_v18, 2 }
 0x128   :  { %v564_v20 = vadd.f32 %v563_v19, %v562_v18 }
 0x12a   :  { %v565_v21 = vrot.slane %v564_v20, 1 }
 0x12c   :  { %v566_v22 = vadd.f32 %v565_v21, %v564_v20 }
 0x12e   :  { %587 = vpush %v566_v22 }
 0x15f   :  { %s588_s2 = spop %587 }
 0x160   :  { %s568_s11 = ssub.f32 0.0, %s588_s2 }
 0x162   :  { %s569_s12 = smul.f32 0.00390625, %s568_s11 }
 0x164   :  { %571 = sst [smem:[#allocation7]] %s569_s12 }
 0x165   :  { %664 = shalt.err (!%p661_p4)
}
 0x166   :  { %s676_s20 = smov [#allocation7]  }
 0x167   :  { %579 = dma.smem_to_hbm %s676_s20, 16, %s980_s3, [#allocation4]  }
 0x168   :  { %669 = dma.done.wait [#allocation4], 16  }
 0x169   :  { %670 = vsyncadd [#allocation4], 4294967280 }
 0x16a   :  { %583 = sfence }
 0x16b   :  { %584 = vsyncpa [#allocation3], 1 }
 0x16c   :  { %585 = vsyncpa [#allocation6], 1 }
 0x16d   :  { %586 = vsyncpa [#allocation4], 1 }

</bundles_post_ra>
